<compile_context>
chip_gen: v7x
topology: tpu7x:2x2x1
jax: 0.10.0
libtpu: 0.0.40
codegen_flags: <defaults>
</compile_context>

<pallas_src>
import functools

import jax
import jax.numpy as jnp
from jax import lax
from jax.experimental import pallas as pl
from jax.experimental.pallas import tpu as pltpu


def _msfa_kernel(w_ref, shift_ref, rmask_ref, cmask_ref, x_ref, o_ref,
                 *, K, W, Lp, Nblk):
    # w_ref:     (C, K*K)     VMEM  depthwise taps with BN scale folded in (f32)
    # shift_ref: (C, 1)       VMEM  fused conv-bias + BN shift (f32)
    # rmask_ref: (K, Lp)      VMEM  row (h) validity per vertical tap offset
    # cmask_ref: (K, Lp)      VMEM  col (w) validity per horizontal tap offset
    # x_ref:     (Nblk, C, Lp) VMEM input block, flattened spatial on lanes
    # o_ref:     (Nblk, C, Lp) VMEM output block
    p = K // 2
    wv = w_ref[...]        # (C, K*K)
    sv = shift_ref[...]    # (C, 1)
    rm = rmask_ref[...]    # (K, Lp)
    cm = cmask_ref[...]    # (K, Lp)

    for n in range(Nblk):                      # small static unroll
        xf = x_ref[n].astype(jnp.float32)      # (C, Lp), cast once per slice

        # K row-shifted, row-masked copies.  roll(x, s)[q] = x[(q - s) % Lp],
        # so to read x[q + d] we roll by (-d) % Lp.  Shifts run on the XLU.
        ys = []
        for i in range(K):
            di = i - p
            if di == 0:
                ys.append(xf)
            else:
                ys.append(pltpu.roll(xf, (-di * W) % Lp, 1) * rm[i:i + 1, :])

        acc = None
        for j in range(K):
            dj = j - p
            accj = None
            for i in range(K):
                t = i * K + j
                yij = ys[i] if dj == 0 else pltpu.roll(ys[i], (-dj) % Lp, 1)
                term = yij * wv[:, t:t + 1]
                accj = term if accj is None else accj + term
            if dj != 0:
                accj = accj * cm[j:j + 1, :]
            acc = accj if acc is None else acc + accj

        o_ref[n] = (acc + sv).astype(o_ref.dtype)


def _choose_batch_block(N, per_item_bytes, budget_bytes=12 << 20, max_nb=8):
    """Batch-block size: fits a conservative VMEM budget, keeps grid >= 2."""
    nb = int(max(1, min(N, budget_bytes // max(per_item_bytes, 1), max_nb)))
    if N >= 2:
        nb = min(nb, max(1, N // 2))   # v7x: shard the parallel axis over 2 TCs
    while N % nb:                      # always correct (worst case nb == 1)
        nb -= 1
    return nb


def msfa_block(x, dw_weight, dw_bias, bn_gamma, bn_beta, bn_mean, bn_var,
               eps=1e-5):
    """x: (N, C, H, W); dw_weight: (C, K, K); per-channel BN params: (C,)."""
    N, C, H, W = x.shape
    K = dw_weight.shape[-1]
    assert K % 2 == 1, "kernel assumes odd depthwise kernel size (padding=K//2)"
    p = K // 2
    L = H * W
    Lp = ((L + 127) // 128) * 128      # lane-dense flattened spatial length

    # Fold Conv2d bias + eval-mode BatchNorm2d:
    #   BN(conv(x) + b) = (gamma*rstd) * conv(x) + (beta + gamma*rstd*(b - mean))
    inv_std = 1.0 / jnp.sqrt(bn_var.astype(jnp.float32) + eps)
    scale = bn_gamma.astype(jnp.float32) * inv_std                        # (C,)
    shift = bn_beta.astype(jnp.float32) + scale * (
        dw_bias.astype(jnp.float32) - bn_mean.astype(jnp.float32))        # (C,)
    w_scaled = (dw_weight.astype(jnp.float32)
                * scale[:, None, None]).reshape(C, K * K)                 # (C, K*K)
    shift_col = shift.reshape(C, 1)                                       # (C, 1)

    # Separable per-tap validity masks on the flattened spatial axis.
    q = jnp.arange(Lp, dtype=jnp.int32)
    hh, ww = q // W, q % W
    in_plane = q < L
    rmask = jnp.stack(
        [((hh + (i - p) >= 0) & (hh + (i - p) < H) & in_plane)
         for i in range(K)]).astype(jnp.float32)                          # (K, Lp)
    cmask = jnp.stack(
        [((ww + (j - p) >= 0) & (ww + (j - p) < W) & in_plane)
         for j in range(K)]).astype(jnp.float32)                          # (K, Lp)

    # Layout-only reshape; pad the lane axis up to a multiple of 128 if needed.
    x_flat = x.reshape(N, C, L)
    if Lp != L:
        x_flat = jnp.pad(x_flat, ((0, 0), (0, 0), (0, Lp - L)))

    itemsize = x.dtype.itemsize
    per_item_bytes = 4 * C * Lp * itemsize     # 2x double-buffered in + 2x out
    Nblk = _choose_batch_block(N, per_item_bytes)
    grid = (N // Nblk,)
    footprint = (Nblk * per_item_bytes
                 + (w_scaled.size + shift_col.size + rmask.size + cmask.size) * 4)
    vmem_limit = int(min(48 << 20, max(16 << 20, footprint + (2 << 20))))

    kern = functools.partial(_msfa_kernel, K=K, W=W, Lp=Lp, Nblk=Nblk)
    out_flat = pl.pallas_call(
        kern,
        out_shape=jax.ShapeDtypeStruct((N, C, Lp), x.dtype),
        grid_spec=pltpu.PrefetchScalarGridSpec(
            num_scalar_prefetch=0,
            grid=grid,
            in_specs=[
                pl.BlockSpec((C, K * K), lambda b: (0, 0)),   # weights, resident
                pl.BlockSpec((C, 1), lambda b: (0, 0)),       # shift, resident
                pl.BlockSpec((K, Lp), lambda b: (0, 0)),      # row masks
                pl.BlockSpec((K, Lp), lambda b: (0, 0)),      # col masks
                pl.BlockSpec((Nblk, C, Lp), lambda b: (b, 0, 0)),   # x block
            ],
            out_specs=pl.BlockSpec((Nblk, C, Lp), lambda b: (b, 0, 0)),
        ),
        compiler_params=pltpu.CompilerParams(
            dimension_semantics=("parallel",),
            vmem_limit_bytes=vmem_limit),
        cost_estimate=pl.CostEstimate(
            flops=22 * N * C * L,
            transcendentals=0,
            bytes_accessed=2 * N * C * Lp * itemsize
            + (w_scaled.size + shift_col.size + rmask.size + cmask.size) * 4),
    )(w_scaled, shift_col, rmask, cmask, x_flat)

    out = out_flat[..., :L] if Lp != L else out_flat
    return out.reshape(N, C, H, W)


def msfa_ref(x, dw_weight, dw_bias, bn_gamma, bn_beta, bn_mean, bn_var,
             eps=1e-5):
    """Pure-JAX reference: depthwise conv + bias + eval-mode BN."""
    N, C, H, W = x.shape
    K = dw_weight.shape[-1]
    p = K // 2
    y = lax.conv_general_dilated(
        x, dw_weight.reshape(C, 1, K, K),
        window_strides=(1, 1), padding=[(p, p), (p, p)],
        feature_group_count=C,
        dimension_numbers=("NCHW", "OIHW", "NCHW"))
    y = y + dw_bias[None, :, None, None]
    inv = 1.0 / jnp.sqrt(bn_var + eps)
    return (bn_gamma[None, :, None, None]
            * (y - bn_mean[None, :, None, None]) * inv[None, :, None, None]
            + bn_beta[None, :, None, None])


if __name__ == "__main__":
    # Small shapes consistent with the module: batch=2, channels=4, spatial=16, kernel=3.
    N, C, H, W, K = 2, 4, 16, 16, 3
    key = jax.random.PRNGKey(0)
    kx, kw, kb, kg, kbe, km, kv = jax.random.split(key, 7)

    x = jax.random.normal(kx, (N, C, H, W), jnp.float32)
    dw_weight = jax.random.normal(kw, (C, K, K), jnp.float32) * 0.1
    dw_bias = jax.random.normal(kb, (C,), jnp.float32) * 0.1
    bn_gamma = 1.0 + 0.1 * jax.random.normal(kg, (C,), jnp.float32)
    bn_beta = 0.1 * jax.random.normal(kbe, (C,), jnp.float32)
    bn_mean = 0.1 * jax.random.normal(km, (C,), jnp.float32)
    bn_var = 0.5 + jnp.abs(jax.random.normal(kv, (C,), jnp.float32))

    out = msfa_block(x, dw_weight, dw_bias, bn_gamma, bn_beta, bn_mean, bn_var)
    out = jax.block_until_ready(out)

    ref = msfa_ref(x, dw_weight, dw_bias, bn_gamma, bn_beta, bn_mean, bn_var)
    assert out.shape == (N, C, H, W)
    assert jnp.allclose(out, ref, atol=1e-4, rtol=1e-4), "mismatch vs reference"

    print("KERNEL_OK")
</pallas_src>

<mosaic_0001>
module attributes {stable_mosaic.version = 11 : i64} {
  func.func @_msfa_kernel(%arg0: i32, %arg1: memref<4x9xf32, #tpu.memory_space<vmem>>, %arg2: memref<4x1xf32, #tpu.memory_space<vmem>>, %arg3: memref<3x256xf32, #tpu.memory_space<vmem>>, %arg4: memref<3x256xf32, #tpu.memory_space<vmem>>, %arg5: memref<1x4x256xf32, #tpu.memory_space<vmem>>, %arg6: memref<1x4x256xf32, #tpu.memory_space<vmem>>) attributes {dimension_semantics = [#tpu.dimension_semantics<parallel>], iteration_bounds = array<i64: 2>, scalar_prefetch = 0 : i64, scratch_operands = 0 : i64, tpu.core_type = #tpu.core_type<tc>, window_params = [{pipeline_mode = #tpu.pipeline_mode<synchronous>, transform_indices = @transform_0, window_bounds = array<i64: 4, 9>}, {pipeline_mode = #tpu.pipeline_mode<synchronous>, transform_indices = @transform_1, window_bounds = array<i64: 4, 1>}, {pipeline_mode = #tpu.pipeline_mode<synchronous>, transform_indices = @transform_2, window_bounds = array<i64: 3, 256>}, {pipeline_mode = #tpu.pipeline_mode<synchronous>, transform_indices = @transform_3, window_bounds = array<i64: 3, 256>}, {transform_indices = @transform_4, window_bounds = array<i64: 1, 4, 256>}, {transform_indices = @transform_5, window_bounds = array<i64: 1, 4, 256>}]} {
    %c0 = arith.constant 0 : index
    %c0_0 = arith.constant 0 : index
    %0 = vector.load %arg1[%c0, %c0_0] : memref<4x9xf32, #tpu.memory_space<vmem>>, vector<4x9xf32>
    %c0_1 = arith.constant 0 : index
    %c0_2 = arith.constant 0 : index
    %1 = vector.load %arg2[%c0_1, %c0_2] : memref<4x1xf32, #tpu.memory_space<vmem>>, vector<4x1xf32>
    %c0_3 = arith.constant 0 : index
    %c0_4 = arith.constant 0 : index
    %2 = vector.load %arg3[%c0_3, %c0_4] : memref<3x256xf32, #tpu.memory_space<vmem>>, vector<3x256xf32>
    %c0_5 = arith.constant 0 : index
    %c0_6 = arith.constant 0 : index
    %3 = vector.load %arg4[%c0_5, %c0_6] : memref<3x256xf32, #tpu.memory_space<vmem>>, vector<3x256xf32>
    %c0_7 = arith.constant 0 : index
    %c0_8 = arith.constant 0 : index
    %c0_9 = arith.constant 0 : index
    %4 = vector.load %arg5[%c0_7, %c0_8, %c0_9] : memref<1x4x256xf32, #tpu.memory_space<vmem>>, vector<1x4x256xf32>
    %5 = vector.shape_cast %4 : vector<1x4x256xf32> to vector<4x256xf32>
    %c16_i32 = arith.constant 16 : i32
    %6 = tpu.dynamic_rotate %5 by %c16_i32 dim 1 : vector<4x256xf32>, i32 -> vector<4x256xf32>
    %7 = vector.extract_strided_slice %2 {offsets = [0, 0], sizes = [1, 256], strides = [1, 1]} : vector<3x256xf32> to vector<1x256xf32>
    %8 = vector.broadcast %7 : vector<1x256xf32> to vector<4x256xf32>
    %9 = arith.mulf %6, %8 : vector<4x256xf32>
    %c240_i32 = arith.constant 240 : i32
    %10 = tpu.dynamic_rotate %5 by %c240_i32 dim 1 : vector<4x256xf32>, i32 -> vector<4x256xf32>
    %11 = vector.extract_strided_slice %2 {offsets = [2, 0], sizes = [1, 256], strides = [1, 1]} : vector<3x256xf32> to vector<1x256xf32>
    %12 = vector.broadcast %11 : vector<1x256xf32> to vector<4x256xf32>
    %13 = arith.mulf %10, %12 : vector<4x256xf32>
    %c1_i32 = arith.constant 1 : i32
    %14 = tpu.dynamic_rotate %9 by %c1_i32 dim 1 : vector<4x256xf32>, i32 -> vector<4x256xf32>
    %15 = vector.extract_strided_slice %0 {offsets = [0, 0], sizes = [4, 1], strides = [1, 1]} : vector<4x9xf32> to vector<4x1xf32>
    %16 = vector.broadcast %15 : vector<4x1xf32> to vector<4x256xf32>
    %17 = arith.mulf %14, %16 : vector<4x256xf32>
    %c1_i32_10 = arith.constant 1 : i32
    %18 = tpu.dynamic_rotate %5 by %c1_i32_10 dim 1 : vector<4x256xf32>, i32 -> vector<4x256xf32>
    %19 = vector.extract_strided_slice %0 {offsets = [0, 3], sizes = [4, 1], strides = [1, 1]} : vector<4x9xf32> to vector<4x1xf32>
    %20 = vector.broadcast %19 : vector<4x1xf32> to vector<4x256xf32>
    %21 = arith.mulf %18, %20 : vector<4x256xf32>
    %22 = arith.addf %17, %21 : vector<4x256xf32>
    %c1_i32_11 = arith.constant 1 : i32
    %23 = tpu.dynamic_rotate %13 by %c1_i32_11 dim 1 : vector<4x256xf32>, i32 -> vector<4x256xf32>
    %24 = vector.extract_strided_slice %0 {offsets = [0, 6], sizes = [4, 1], strides = [1, 1]} : vector<4x9xf32> to vector<4x1xf32>
    %25 = vector.broadcast %24 : vector<4x1xf32> to vector<4x256xf32>
    %26 = arith.mulf %23, %25 : vector<4x256xf32>
    %27 = arith.addf %22, %26 : vector<4x256xf32>
    %28 = vector.extract_strided_slice %3 {offsets = [0, 0], sizes = [1, 256], strides = [1, 1]} : vector<3x256xf32> to vector<1x256xf32>
    %29 = vector.broadcast %28 : vector<1x256xf32> to vector<4x256xf32>
    %30 = arith.mulf %27, %29 : vector<4x256xf32>
    %31 = vector.extract_strided_slice %0 {offsets = [0, 1], sizes = [4, 1], strides = [1, 1]} : vector<4x9xf32> to vector<4x1xf32>
    %32 = vector.broadcast %31 : vector<4x1xf32> to vector<4x256xf32>
    %33 = arith.mulf %9, %32 : vector<4x256xf32>
    %34 = vector.extract_strided_slice %0 {offsets = [0, 4], sizes = [4, 1], strides = [1, 1]} : vector<4x9xf32> to vector<4x1xf32>
    %35 = vector.broadcast %34 : vector<4x1xf32> to vector<4x256xf32>
    %36 = arith.mulf %5, %35 : vector<4x256xf32>
    %37 = arith.addf %33, %36 : vector<4x256xf32>
    %38 = vector.extract_strided_slice %0 {offsets = [0, 7], sizes = [4, 1], strides = [1, 1]} : vector<4x9xf32> to vector<4x1xf32>
    %39 = vector.broadcast %38 : vector<4x1xf32> to vector<4x256xf32>
    %40 = arith.mulf %13, %39 : vector<4x256xf32>
    %41 = arith.addf %37, %40 : vector<4x256xf32>
    %42 = arith.addf %30, %41 : vector<4x256xf32>
    %c255_i32 = arith.constant 255 : i32
    %43 = tpu.dynamic_rotate %9 by %c255_i32 dim 1 : vector<4x256xf32>, i32 -> vector<4x256xf32>
    %44 = vector.extract_strided_slice %0 {offsets = [0, 2], sizes = [4, 1], strides = [1, 1]} : vector<4x9xf32> to vector<4x1xf32>
    %45 = vector.broadcast %44 : vector<4x1xf32> to vector<4x256xf32>
    %46 = arith.mulf %43, %45 : vector<4x256xf32>
    %c255_i32_12 = arith.constant 255 : i32
    %47 = tpu.dynamic_rotate %5 by %c255_i32_12 dim 1 : vector<4x256xf32>, i32 -> vector<4x256xf32>
    %48 = vector.extract_strided_slice %0 {offsets = [0, 5], sizes = [4, 1], strides = [1, 1]} : vector<4x9xf32> to vector<4x1xf32>
    %49 = vector.broadcast %48 : vector<4x1xf32> to vector<4x256xf32>
    %50 = arith.mulf %47, %49 : vector<4x256xf32>
    %51 = arith.addf %46, %50 : vector<4x256xf32>
    %c255_i32_13 = arith.constant 255 : i32
    %52 = tpu.dynamic_rotate %13 by %c255_i32_13 dim 1 : vector<4x256xf32>, i32 -> vector<4x256xf32>
    %53 = vector.extract_strided_slice %0 {offsets = [0, 8], sizes = [4, 1], strides = [1, 1]} : vector<4x9xf32> to vector<4x1xf32>
    %54 = vector.broadcast %53 : vector<4x1xf32> to vector<4x256xf32>
    %55 = arith.mulf %52, %54 : vector<4x256xf32>
    %56 = arith.addf %51, %55 : vector<4x256xf32>
    %57 = vector.extract_strided_slice %3 {offsets = [2, 0], sizes = [1, 256], strides = [1, 1]} : vector<3x256xf32> to vector<1x256xf32>
    %58 = vector.broadcast %57 : vector<1x256xf32> to vector<4x256xf32>
    %59 = arith.mulf %56, %58 : vector<4x256xf32>
    %60 = arith.addf %42, %59 : vector<4x256xf32>
    %61 = vector.broadcast %1 : vector<4x1xf32> to vector<4x256xf32>
    %62 = arith.addf %60, %61 : vector<4x256xf32>
    %c0_14 = arith.constant 0 : index
    %c0_15 = arith.constant 0 : index
    %c0_16 = arith.constant 0 : index
    %63 = vector.load %arg6[%c0_14, %c0_15, %c0_16] : memref<1x4x256xf32, #tpu.memory_space<vmem>>, vector<1x4x256xf32>
    %64 = vector.shape_cast %63 : vector<1x4x256xf32> to vector<4x256xf32>
    %65 = vector.shape_cast %62 : vector<4x256xf32> to vector<1x4x256xf32>
    tpu.vector_store %arg6[%c0_14, %c0_15, %c0_16], %65 {strides = array<i32>} : memref<1x4x256xf32, #tpu.memory_space<vmem>>, vector<1x4x256xf32>,
    return
  }
  func.func @transform_0(%arg0: i32) -> (i32, i32) {
    %c0_i32 = arith.constant 0 : i32
    %c0_i32_0 = arith.constant 0 : i32
    %c0_i32_1 = arith.constant 0 : i32
    return %c0_i32, %c0_i32_0 : i32, i32
  }
  func.func @transform_1(%arg0: i32) -> (i32, i32) {
    %c0_i32 = arith.constant 0 : i32
    %c0_i32_0 = arith.constant 0 : i32
    %c0_i32_1 = arith.constant 0 : i32
    return %c0_i32, %c0_i32_0 : i32, i32
  }
  func.func @transform_2(%arg0: i32) -> (i32, i32) {
    %c0_i32 = arith.constant 0 : i32
    %c0_i32_0 = arith.constant 0 : i32
    %c0_i32_1 = arith.constant 0 : i32
    return %c0_i32, %c0_i32_0 : i32, i32
  }
  func.func @transform_3(%arg0: i32) -> (i32, i32) {
    %c0_i32 = arith.constant 0 : i32
    %c0_i32_0 = arith.constant 0 : i32
    %c0_i32_1 = arith.constant 0 : i32
    return %c0_i32, %c0_i32_0 : i32, i32
  }
  func.func @transform_4(%arg0: i32) -> (i32, i32, i32) {
    %c0_i32 = arith.constant 0 : i32
    %c0_i32_0 = arith.constant 0 : i32
    %c0_i32_1 = arith.constant 0 : i32
    return %arg0, %c0_i32, %c0_i32_0 : i32, i32, i32
  }
  func.func @transform_5(%arg0: i32) -> (i32, i32, i32) {
    %c0_i32 = arith.constant 0 : i32
    %c0_i32_0 = arith.constant 0 : i32
    %c0_i32_1 = arith.constant 0 : i32
    return %arg0, %c0_i32, %c0_i32_0 : i32, i32, i32
  }
}

</mosaic_0001>

<bundles_post_ra>
// kernel: tpu_custom_call.1
= control target key start
LH: loop header
LB: loop body
LE: loop exit
PB: predicated region body
PF: predicated region fallthrough
CT: control target
= control target key end

     0   :  { %10 = vsyncpa [#allocation3], 0  ;;  %s1119_s0 = inlined_call_operand.vmem [shape: f32[4,9], index: 0, kind: input, shape index: {}]   ;;  %s1120_s1 = inlined_call_operand.vmem [shape: f32[4,1], index: 1, kind: input, shape index: {}]   ;;  %s1121_s2 = inlined_call_operand.hbm [shape: f32[3,256], index: 2, kind: input, shape index: {}]   ;;  %s1122_s3 = inlined_call_operand.hbm [shape: f32[3,256], index: 3, kind: input, shape index: {}]   ;;  %s1123_s4 = inlined_call_operand.vmem [shape: f32[2,4,256], index: 4, kind: input, shape index: {}]   ;;  %s1124_s5 = inlined_call_operand.hbm [shape: f32[2,4,256], index: 5, kind: output, shape index: {}]  }
   0x1   :  { %11 = vsyncpa [#allocation6], 0 }
   0x2   :  { %12 = vsyncpa [#allocation4], 0 }
   0x3   :  { %14 = vsyncpa [#allocation4 + $0x1], 0  ;;  %s859_s18 = smov 0   ;;  %s861_s19 = smov 0  }
   0x4   :  { %s863_s20 = smov 0   ;;  %s865_s21 = smov 0  }
   0x5 LB: > { %s880_s22 = sadd.s32 4294967295, %s810_s21   ;;  %s581_s23 = sadd.s32 4294967294, %s810_s21   ;;  %s810_s21 = sphi %s865_s21, %s1142_s21   ;;  %s806_s20 = sphi %s863_s20, %s1141_s20   ;;  %s802_s19 = sphi %s861_s19, %s1140_s19   ;;  %s798_s18 = sphi %s859_s18, %s1139_s18  }
   0x6   : > { %s884_s24 = sadd.s32 1, %s810_s21   ;;  %s137_s25 = sadd.s32 1, %s806_s20 }
   0x7   : > { %s134_s26 = ssub.s32 %s810_s21, %s884_s24  ;;  %p147_p0 = scmp.ne.s32.totalorder %s806_s20, %s802_s19 }
   0x8   : > { %p135_p1 = scmp.eq.s32.totalorder %s134_s26, 0  ;;  %p148_p2 = scmp.eq.s32.totalorder %s880_s22, 1 }
   0x9   : > { %p153_p3 = scmp.ne.s32.totalorder %s802_s19, %s798_s18  ;;  %p154_p4 = scmp.eq.s32.totalorder %s581_s23, 1 }
   0xa   : > { %s895_s27 = scalar_select %p135_p1, %s806_s20, %s137_s25  }
   0xb   : > { %p897_p5 = por %p148_p2, %p147_p0  ;;  %p901_p6 = por %p154_p4, %p153_p3 }
   0xc   : > { %p582_p7 = scmp.ge.s32.totalorder %s810_s21, 1  ;;  %p161_p8 = scmp.lt.s32.totalorder %s810_s21, 3 }
   0xd   : > { %s1128_s28 = scalar_select %p897_p5, 1, 0 }
   0xe   : > { %s1129_s29 = scalar_select %p901_p6, 1, 0 }
   0xf   : > { %p1125_p9 = scmp.eq.s32.totalorder %s880_s22, 0  ;;  %p908_p10 = pnand %p582_p7, %p161_p8 }
  0x10   : > { %s812_s6 = smov [#allocation2]   ;;  %s813_s8 = smov [#allocation5]  }
  0x11   : > { %s1130_s30 = scalar_select %p908_p10, 1, 0 }
  0x12   : > { %s180_s7 = sshll.u32 %s812_s6, 4  ;;  %p609_p11 = pneg %p908_p10  ;;  %s181_s7 = int_to_ptr.vmem [resolvable:$true] %s180_s7 }
  0x13   : > { %s191_s9 = sshll.u32 %s813_s8, 4  ;;  %s684_s13 = scalar_lea.hbm %s1121_s2, 128  ;;  %s920_s9 = int_to_ptr.vmem [resolvable:$true] %s191_s9 }
  0x14   : > { %p916_p12 = pnand %p1125_p9, %p609_p11  ;;  %p685_p13 = scmp.ne.s32.totalorder %s1121_s2, %s684_s13 }
  0x15   : > { %p691_p3 = scmp.lt.u32.totalorder %s684_s13, %s1121_s2 }
  0x16   : > { %p686_p0 = pneg %p916_p12 }
  0x18   : > { %p687_p1 = pnand %p686_p0, %p685_p13 }
  0x1a   : > { %p688_p2 = pneg %p687_p1 }
  0x1c   : > { %p693_p4 = pnand %p691_p3, %p688_p2 }
  0x1e   : > { %696 = shalt.err (!%p693_p4)
}
  0x1f   : > { %s697_s23 = scalar_lea.vmem %s181_s7, 128  ;;  %p705_p9 = scmp.lt.s32.totalorder %s181_s7, %s181_s7 }
  0x20   : > { %p698_p7 = scmp.ne.s32.totalorder %s181_s7, %s697_s23  ;;  %p706_p6 = scmp.lt.s32.totalorder %s697_s23, %s697_s23 }
  0x22   : > { %p700_p8 = pnand %p698_p7, %p686_p0  ;;  %p707_p5 = por %p706_p6, %p705_p9 }
  0x24   : > { %p701_p11 = pneg %p700_p8 }
  0x26   : > { %p708_p10 = pnand %p707_p5, %p701_p11 }
  0x28   : > { %711 = shalt.err (!%p708_p10)
}
  0x29   : > { %612 = dma.hbm_to_vmem [thread:$0]  (!%p916_p12), %s1121_s2, 128, %s181_s7, [#allocation3]  }
  0x2a   : > { %s712_s11 = scalar_lea.hbm %s1122_s3, 128 }
  0x2b   : > { %p713_p13 = scmp.ne.s32.totalorder %s1122_s3, %s712_s11  ;;  %p719_p9 = scmp.lt.u32.totalorder %s712_s11, %s1122_s3 }
  0x2d   : > { %p715_p6 = pnand %p713_p13, %p686_p0 }
  0x2f   : > { %p716_p5 = pneg %p715_p6 }
  0x31   : > { %p721_p10 = pnand %p719_p9, %p716_p5 }
  0x33   : > { %724 = shalt.err (!%p721_p10)
}
  0x34   : > { %s725_s7 = scalar_lea.vmem %s920_s9, 128  ;;  %p733_p4 = scmp.lt.s32.totalorder %s920_s9, %s920_s9 }
  0x35   : > { %p726_p1 = scmp.ne.s32.totalorder %s920_s9, %s725_s7  ;;  %p734_p7 = scmp.lt.s32.totalorder %s725_s7, %s725_s7 }
  0x37   : > { %p728_p2 = pnand %p726_p1, %p686_p0  ;;  %p735_p8 = por %p734_p7, %p733_p4 }
  0x39   : > { %p729_p3 = pneg %p728_p2 }
  0x3b   : > { %p736_p11 = pnand %p735_p8, %p729_p3 }
  0x3d   : > { %739 = shalt.err (!%p736_p11)
}
  0x3e   : > { %615 = dma.hbm_to_vmem [thread:$0]  (!%p916_p12), %s1122_s3, 128, %s920_s9, [#allocation6]  }
  0x3f   : > { %p1132_p13 = scmp.ne.s32.totalorder %s1130_s30, 0 }
  0x40   : > { %p1133_p6 = scmp.eq.s32.totalorder (!%p1132_p13), %s880_s22, 0 }
  0x41   : > { %212 = sbr.rel (%p1132_p13) target bundleno = 368 (0x170), region = 40 }
  0x48   : > { %785 = dma.done.wait (%p1133_p6), [#allocation3], 128   ;;  %p1134_p0 = pmov %p1133_p6 }
  0x4a   : > { %787 = vsyncadd (%p1134_p0), [#allocation3], 4294967168  ;;  %p1135_p5 = pmov %p1134_p0 }
  0x4b   : > { %p1136_p9 = pmov %p1134_p0 }
  0x4c   : > { %789 = dma.done.wait (%p1135_p5), [#allocation6], 128  }
  0x4d   : > { %791 = vsyncadd (%p1136_p9), [#allocation6], 4294967168  ;;  %p244_p10 = scmp.lt.s32.totalorder %s880_s22, 1  ;;  %v814_v0 = vmov 0   ;;  %v815_v1 = vmov 4   ;;  %s816_s26 = smov 112   ;;  %v261_v12 = vlaneseq }
  0x4e   : > { %674 = vset.pattern.permute.xlu1 %v814_v0  ;;  %673 = vset.pattern.permute.xlu0 %v815_v1  ;;  %s817_s6 = smov 16   ;;  %v249_v4 = vld [vmem:[%s1119_s0] sm:$0xf]  ;;  %v818_v5 = vmov 3   ;;  %v819_v6 = vmov 6   ;;  %v820_v7 = vmov 1  }
  0x4f   : > { %s245_s9 = scalar_select %p244_p10, %s880_s22, 1  ;;  %v821_v8 = vmov 5   ;;  %v822_v9 = vmov 2   ;;  %v825_v10 = vmov 7   ;;  %v826_v11 = vmov 8  }
  0x50   : > { %s823_s12 = smov 1   ;;  %s824_s13 = smov 127   ;;  %v999_v13 = vshrl.u32 %v261_v12, 7  ;;  %v251_v16 = vld [vmem:[#allocation2] sm:$0x77]  ;;  %v1005_v17 = vand.u32 127, %v261_v12 }
  0x51   : > { %s597_s30 = sshll.u32 %s245_s9, 3  ;;  %v827_v40 = vmov 839922192   ;;  %v250_v45 = vld [vmem:[%s1120_s1] sm:$0xf]  ;;  %s241_s7 = sand.u32 1, %s802_s19  }
  0x52   : > { %s248_s25 = scalar_lea.vmem %s1123_s4, %s597_s30  ;;  %v1002_v14 = vsub.s32 0, %v999_v13  ;;  %v273_v15 = vsub.s32 4, %v999_v13  ;;  %v1008_v18 = vsub.s32 2, %v999_v13  ;;  %v300_v19 = vsub.s32 6, %v999_v13  ;;  %s589_s16 = sshll.u32 %s241_s7, 3 }
  0x53   : > { %v984_v2 = vld [vmem:[%s248_s25] sm:$0xff]  ;;  %vm263_vm0 = vcmp.lt.s32.totalorder %v1005_v17, 16  ;;  %vm291_vm1 = vcmp.lt.s32.totalorder %v1005_v17, 112  ;;  %v387_v41 = vunpack.c.l.s4 %v827_v40  ;;  %vm318_vm2 = vcmp.lt.s32.totalorder %v1005_v17, 1  ;;  %s598_s17 = sshll.u32 %s880_s22, 7  ;;  %s243_s9 = scalar_lea.vmem [#allocation7], %s589_s16 }
  0x54   : > { %287 = vrot.lane.b32.xlu1 %v984_v2, %s816_s26  ;;  %257 = vrot.lane.b32.xlu0 %v984_v2, %s817_s6  ;;  %v255_v3 = vcombine.high %v984_v2, %v984_v2  ;;  %v270_v20 = vrot.slane %v251_v16, %v1002_v14  ;;  %v274_v21 = vrot.slane %v251_v16, %v273_v15  ;;  %vm414_vm3 = vcmp.lt.s32.totalorder %v1005_v17, 127  ;;  %s500_s30 = sshll.u32 %s243_s9, 4  ;;  %s1077_s25 = scalar_lea.hbm %s1124_s5, %s598_s17  ;;  %s1079_s30 = int_to_ptr.vmem [resolvable:$true] %s500_s30 }
  0x55   : > { %v297_v24 = vrot.slane %v251_v16, %v1008_v18  ;;  %v301_v25 = vrot.slane %v251_v16, %v300_v19  ;;  %v388_v42 = vunpack.c.0.s8 %v387_v41  ;;  %p1137_p1 = scmp.ne.s32.totalorder %s1128_s28, 0  ;;  %s828_s22 = smov [#allocation7]  }
  0x56   : > { %v280_v26 = vrot.slane %v270_v20, %v1002_v14  ;;  %v284_v27 = vrot.slane %v274_v21, %v1002_v14  ;;  %s744_s8 = sshll.u32 %s828_s22, 4  ;;  %s745_s8 = int_to_ptr.vmem [resolvable:$false] %s744_s8 }
  0x57   : > { %v307_v32 = vrot.slane %v297_v24, %v1008_v18  ;;  %v311_v33 = vrot.slane %v301_v25, %v1008_v18  ;;  %v391_v43 = vsub.s32 %v388_v42, %v999_v13  ;;  %s746_s11 = scalar_lea.vmem %s745_s8, 256  ;;  %p747_p4 = scmp.lt.s32.totalorder %s1079_s30, %s745_s8 }
  0x58   : > { %289 = vrot.lane.b32.xlu1 %v255_v3, %s816_s26  ;;  %259 = vrot.lane.b32.xlu0 %v255_v3, %s817_s6  ;;  %s486_s26 = scalar_lea.sflag [#allocation4], %s241_s7  ;;  %s740_s6 = scalar_lea.vmem %s1079_s30, 128 }
  0x59   : > { %p741_p12 = scmp.ne.s32.totalorder %s1079_s30, %s740_s6  ;;  %p748_p7 = scmp.lt.s32.totalorder %s746_s11, %s740_s6 }
  0x5b   : > { %p742_p2 = pnand %p741_p12, %p1137_p1  ;;  %p749_p8 = por %p748_p7, %p747_p4 }
  0x5c   : > { %323 = vperm.xlu1 %674, %v249_v4   ;;  %384 = vperm.xlu0 %673, %v249_v4  }
  0x5d   : > { %p743_p3 = pneg %p742_p2 }
  0x5f   : > { %p750_p11 = pnand %p749_p8, %p743_p3 }
  0x60   : > { %675 = vset.pattern.permute.xlu1 %v818_v5  ;;  %676 = vset.pattern.permute.xlu0 %v819_v6 }
  0x61   : > { %335 = vperm.xlu1 %675, %v249_v4   ;;  %349 = vperm.xlu0 %676, %v249_v4  }
  0x65   : > { %677 = vset.pattern.permute.xlu1 %v820_v7  ;;  %679 = vset.pattern.permute.xlu0 %v821_v8 }
  0x66   : > { %378 = vperm.xlu1 %677, %v249_v4   ;;  %430 = vperm.xlu0 %679, %v249_v4  }
  0x6a   : > { %678 = vset.pattern.permute.xlu1 %v822_v9  ;;  %328 = vrot.lane.b32.xlu0 %v984_v2, %s823_s12 }
  0x6b   : > { %418 = vperm.xlu1 %678, %v249_v4   ;;  %682 = vset.pattern.permute.xlu0 %v814_v0 }
  0x6e   : > { %423 = vrot.lane.b32.xlu0 %v984_v2, %s824_s13 }
  0x6f   : > { %680 = vset.pattern.permute.xlu1 %v825_v10 }
  0x70   : > { %401 = vperm.xlu1 %680, %v249_v4  }
  0x74   : > { %681 = vset.pattern.permute.xlu1 %v826_v11 }
  0x75   : > { %444 = vperm.xlu1 %681, %v249_v4  }
  0x79   : > { %330 = vrot.lane.b32.xlu1 %v255_v3, %s823_s12 }
  0x7d   : > { %425 = vrot.lane.b32.xlu1 %v255_v3, %s824_s13 }
  0xc6   : > { %v288_v22 = vpop.permute.xlu1 %287  ;;  %v258_v23 = vpop.permute.xlu0 %257 }
  0xca   : > { %v290_v28 = vpop.permute.xlu1 %289  ;;  %v260_v29 = vpop.permute.xlu0 %259 }
  0xcb   : > { %v264_v30 = vsel %vm263_vm0, %v258_v23, %v260_v29  ;;  %v265_v31 = vsel %vm263_vm0, %v260_v29, %v258_v23  ;;  %v292_v36 = vsel %vm291_vm1, %v288_v22, %v290_v28  ;;  %v293_v37 = vsel %vm291_vm1, %v290_v28, %v288_v22 }
  0xcc   : > { %v285_v34 = vmul.f32 %v280_v26, %v265_v31  ;;  %v286_v35 = vmul.f32 %v284_v27, %v264_v30  ;;  %v312_v38 = vmul.f32 %v307_v32, %v292_v36  ;;  %v313_v39 = vmul.f32 %v311_v33, %v293_v37 }
  0xce   : > { %316 = vrot.lane.b32.xlu1 %v286_v35, %s823_s12  ;;  %314 = vrot.lane.b32.xlu0 %v285_v34, %s823_s12 }
  0xd2   : > { %344 = vrot.lane.b32.xlu1 %v313_v39, %s823_s12  ;;  %342 = vrot.lane.b32.xlu0 %v312_v38, %s823_s12 }
  0xd6   : > { %412 = vrot.lane.b32.xlu1 %v286_v35, %s824_s13  ;;  %410 = vrot.lane.b32.xlu0 %v285_v34, %s824_s13 }
  0xda   : > { %439 = vrot.lane.b32.xlu1 %v313_v39, %s824_s13  ;;  %437 = vrot.lane.b32.xlu0 %v312_v38, %s824_s13 }
  0xdb   : > { %v324_v44 = vpop.permute.xlu1 %323  ;;  %v385_v46 = vpop.permute.xlu0 %384 }
  0xdc   : > { %v392_v47 = vrot.slane %v385_v46, %v391_v43 }
  0xde   : > { %475 = vperm.xlu0 %682, %v250_v45   ;;  %v394_v49 = vmul.f32 %v392_v47, %v984_v2  ;;  %v252_v2 = vld [vmem:[#allocation5] sm:$0x77] }
  0xdf   : > { %v360_v8 = vrot.slane %v252_v2, %v1002_v14  ;;  %v364_v9 = vrot.slane %v252_v2, %v273_v15  ;;  %v454_v37 = vrot.slane %v252_v2, %v1008_v18 }
  0xe0   : > { %v336_v48 = vpop.permute.xlu1 %335  ;;  %v396_v50 = vcombine.high %v394_v49, %v394_v49  ;;  %v350_v62 = vpop.permute.xlu0 %349 }
  0xe1   : > { %v370_v27 = vrot.slane %v360_v8, %v1002_v14  ;;  %v374_v28 = vrot.slane %v364_v9, %v1002_v14 }
  0xe5   : > { %v379_v51 = vpop.permute.xlu1 %378  ;;  %v431_v0 = vpop.permute.xlu0 %430 }
  0xe6   : > { %v381_v52 = vmul.f32 %v379_v51, %v285_v34  ;;  %v382_v53 = vmul.f32 %v379_v51, %v286_v35 }
  0xe8   : > { %v398_v54 = vadd.f32 %v394_v49, %v381_v52  ;;  %v399_v55 = vadd.f32 %v396_v50, %v382_v53  ;;  %v464_v52 = vrot.slane %v454_v37, %v1008_v18 }
  0xe9   : > { %v329_v3 = vpop.permute.xlu0 %328 }
  0xea   : > { %v419_v56 = vpop.permute.xlu1 %418 }
  0xed   : > { %v424_v5 = vpop.permute.xlu0 %423 }
  0xef   : > { %v402_v57 = vpop.permute.xlu1 %401 }
  0xf0   : > { %v404_v58 = vmul.f32 %v402_v57, %v312_v38  ;;  %v405_v59 = vmul.f32 %v402_v57, %v313_v39  ;;  %v458_v38 = vrot.slane %v252_v2, %v300_v19 }
  0xf2   : > { %v406_v60 = vadd.f32 %v404_v58, %v398_v54  ;;  %v407_v61 = vadd.f32 %v405_v59, %v399_v55  ;;  %v468_v53 = vrot.slane %v458_v38, %v1008_v18 }
  0xf4   : > { %v445_v63 = vpop.permute.xlu1 %444 }
  0xf8   : > { %v331_v1 = vpop.permute.xlu1 %330 }
  0xf9   : > { %v332_v10 = vsel %vm318_vm2, %v329_v3, %v331_v1  ;;  %v333_v11 = vsel %vm318_vm2, %v331_v1, %v329_v3 }
  0xfa   : > { %v338_v22 = vmul.f32 %v336_v48, %v333_v11  ;;  %v339_v23 = vmul.f32 %v336_v48, %v332_v10 }
  0xfc   : > { %v426_v4 = vpop.permute.xlu1 %425 }
  0xfd   : > { %v427_v39 = vsel %vm414_vm3, %v424_v5, %v426_v4  ;;  %v428_v40 = vsel %vm414_vm3, %v426_v4, %v424_v5 }
  0xfe   : > { %v433_v46 = vmul.f32 %v431_v0, %v427_v39  ;;  %v434_v47 = vmul.f32 %v431_v0, %v428_v40 }
 0x140   : > { %v317_v6 = vpop.permute.xlu1 %316  ;;  %v315_v7 = vpop.permute.xlu0 %314 }
 0x141   : > { %v319_v12 = vsel %vm318_vm2, %v315_v7, %v317_v6  ;;  %v320_v16 = vsel %vm318_vm2, %v317_v6, %v315_v7 }
 0x142   : > { %v326_v20 = vmul.f32 %v324_v44, %v320_v16  ;;  %v327_v21 = vmul.f32 %v324_v44, %v319_v12 }
 0x144   : > { %v345_v24 = vpop.permute.xlu1 %344  ;;  %v343_v15 = vpop.permute.xlu0 %342  ;;  %v340_v29 = vadd.f32 %v338_v22, %v326_v20  ;;  %v341_v30 = vadd.f32 %v339_v23, %v327_v21 }
 0x145   : > { %v346_v25 = vsel %vm318_vm2, %v343_v15, %v345_v24  ;;  %v347_v26 = vsel %vm318_vm2, %v345_v24, %v343_v15 }
 0x146   : > { %v352_v31 = vmul.f32 %v350_v62, %v347_v26  ;;  %v353_v32 = vmul.f32 %v350_v62, %v346_v25 }
 0x148   : > { %v354_v33 = vadd.f32 %v352_v31, %v340_v29  ;;  %v355_v34 = vadd.f32 %v353_v32, %v341_v30  ;;  %v413_v35 = vpop.permute.xlu1 %412  ;;  %v411_v36 = vpop.permute.xlu0 %410 }
 0x149   : > { %v415_v14 = vsel %vm414_vm3, %v411_v36, %v413_v35  ;;  %v416_v41 = vsel %vm414_vm3, %v413_v35, %v411_v36 }
 0x14a   : > { %v421_v42 = vmul.f32 %v419_v56, %v415_v14  ;;  %v422_v43 = vmul.f32 %v419_v56, %v416_v41  ;;  %v375_v44 = vmul.f32 %v370_v27, %v354_v33  ;;  %v376_v45 = vmul.f32 %v374_v28, %v355_v34 }
 0x14c   : > { %v440_v13 = vpop.permute.xlu1 %439  ;;  %v438_v19 = vpop.permute.xlu0 %437  ;;  %v408_v48 = vadd.f32 %v406_v60, %v375_v44  ;;  %v409_v49 = vadd.f32 %v407_v61, %v376_v45  ;;  %v435_v54 = vadd.f32 %v433_v46, %v421_v42  ;;  %v436_v55 = vadd.f32 %v434_v47, %v422_v43 }
 0x14d   : > { %v441_v50 = vsel %vm414_vm3, %v438_v19, %v440_v13  ;;  %v442_v51 = vsel %vm414_vm3, %v440_v13, %v438_v19 }
 0x14e   : > { %v447_v56 = vmul.f32 %v445_v63, %v441_v50  ;;  %v448_v57 = vmul.f32 %v445_v63, %v442_v51 }
 0x150   : > { %v449_v58 = vadd.f32 %v447_v56, %v435_v54  ;;  %v450_v59 = vadd.f32 %v448_v57, %v436_v55 }
 0x152   : > { %v469_v60 = vmul.f32 %v464_v52, %v449_v58  ;;  %v470_v62 = vmul.f32 %v468_v53, %v450_v59 }
 0x154   : > { %v471_v61 = vadd.f32 %v469_v60, %v408_v48  ;;  %v472_v0 = vadd.f32 %v470_v62, %v409_v49 }
 0x15d   : > { %v476_v17 = vpop.permute.xlu0 %475 }
 0x15e   : > { %v478_v1 = vadd.f32 %v476_v17, %v471_v61  ;;  %v479_v3 = vadd.f32 %v476_v17, %v472_v0 }
 0x160   : > { %v482_v18 = vcombine.low %v478_v1, %v479_v3 }
 0x162   : > { %484 = vst [vmem:[%s243_s9] sm:$0xff] %v482_v18 }
 0x163   : > { %753 = shalt.err (!%p750_p11)
}
 0x164   : > { %s754_s12 = scalar_lea.hbm %s1077_s25, 128  ;;  %s758_s15 = scalar_lea.hbm %s1124_s5, 256 }
 0x165   : > { %p755_p13 = scmp.ne.s32.totalorder %s1077_s25, %s754_s12  ;;  %p759_p5 = scmp.lt.u32.totalorder %s1077_s25, %s1124_s5 }
 0x166   : > { %p760_p9 = scmp.lt.u32.totalorder %s758_s15, %s754_s12  ;;  %p762_p12 = scmp.lt.u32.totalorder %s754_s12, %s1077_s25 }
 0x167   : > { %p756_p6 = pnand %p755_p13, %p1137_p1 }
 0x168   : > { %p761_p10 = por %p760_p9, %p759_p5 }
 0x169   : > { %p757_p0 = pneg %p756_p6 }
 0x16a   : > { %p763_p2 = por %p762_p12, %p761_p10 }
 0x16c   : > { %p764_p3 = pnand %p763_p2, %p757_p0 }
 0x16e   : > { %767 = shalt.err (!%p764_p3)
}
 0x16f   : > { %607 = dma.vmem_to_hbm [thread:$0]  (%p1137_p1), %s1079_s30, 128, %s1077_s25, %s486_s26  }
 0x170 PF: > { %p624_p4 = scmp.ge.s32.totalorder %s810_s21, 2  ;;  %s512_s17 = sand.u32 1, %s798_s18  }
 0x171   : > { %p1138_p7 = scmp.ne.s32.totalorder %s1129_s29, 0  ;;  %s513_s9 = scalar_lea.sflag [#allocation4], %s512_s17 }
 0x173   : > { %p617_p8 = pnand %p624_p4, %p1138_p7 }
 0x175   : > { %793 = dma.done.wait (!%p617_p8), %s513_s9, 128  }
 0x176   : > { %795 = vsyncadd (!%p617_p8), %s513_s9, 4294967168  ;;  %p17_p11 = scmp.ge.s32.totalorder %s884_s24, 4   ;;  %s1139_s18 = smov %s802_s19 }
 0x177   : > { %s1140_s19 = smov %s806_s20  ;;  %s1141_s20 = smov %s895_s27 }
 0x178   : > { %s1142_s21 = smov %s884_s24  ;;  %19 = sbr.rel (!%p17_p11) target bundleno = 5 (0x5), region = 84 }
 0x17f   :  { %518 = vsyncpa [#allocation3], 1 }
 0x180   :  { %520 = vsyncpa [#allocation3 + $0x1], 1 }
 0x181   :  { %521 = vsyncpa [#allocation6], 1 }
 0x182   :  { %522 = vsyncpa [#allocation4], 1 }
 0x183   :  { %524 = vsyncpa [#allocation4 + $0x1], 1 }

</bundles_post_ra>
